<compile_context>
chip_gen: v5e
topology: v5e:2x2
jax: 0.10.0
libtpu: 0.0.40
codegen_flags: <defaults>
</compile_context>

<pallas_src>
import jax
import jax.numpy as jnp
from jax.experimental import pallas as pl
from jax.experimental.pallas import tpu as pltpu


def mlp_kernel(x_ref, w1_ref, b1_ref, w2_ref, b2_ref, w3_ref, b3_ref, o_ref):
    w_dtype = w2_ref.dtype  # compute dtype for the MXU operands (f32 or bf16)

    # fc1 + ReLU  (MXU matmul, f32 accumulation, f32 epilogue)
    h1 = jnp.dot(x_ref[...], w1_ref[...], preferred_element_type=jnp.float32)
    h1 = jnp.maximum(h1 + b1_ref[...], 0.0)

    # fc2 + ReLU
    h2 = jnp.dot(h1.astype(w_dtype), w2_ref[...], preferred_element_type=jnp.float32)
    h2 = jnp.maximum(h2 + b2_ref[...], 0.0)                       # (TB, 10) f32

    # fc3 (10 -> 1): VPU broadcast-multiply + cross-lane reduce; an N=1 MXU matmul
    # would waste a full systolic pass on a dot product.
    w3_row = w3_ref[...].astype(jnp.float32)                      # (1, 10)
    out_col = jnp.sum(h2 * w3_row, axis=1, keepdims=True)         # (TB, 1)
    out_col = out_col + b3_ref[0, 0]                              # scalar bias from SMEM

    # Lane-dense store: put the batch on the lane axis of the (1, TB) output block.
    o_ref[...] = jnp.transpose(out_col).astype(o_ref.dtype)


def net_forward(x, params, *, tb=512, compute_dtype=None):
    """Forward pass of Net.  x: (B, input_size) -> (B, 1)."""
    w1, b1, w2, b2, w3, b3 = params
    B, F = x.shape

    # Optional narrow compute dtype for the bandwidth-bound x/weight streams
    # (recommended bf16 on v6e/v7x; biases + epilogues stay f32).
    if compute_dtype is not None:
        x = x.astype(compute_dtype)
        w1 = w1.astype(compute_dtype)
        w2 = w2.astype(compute_dtype)

    # Batch tile: multiple of 128 lanes, as large as useful but not beyond the
    # padded batch.  (On v7x's 64 MiB VMEM keep 2*TB*F*itemsize comfortably small;
    # the default 512 is far below that for typical input_size.)
    tb = max(128, min(int(tb), pl.cdiv(B, 128) * 128))
    tb = (tb // 128) * 128
    b_pad = pl.cdiv(B, tb) * tb
    if b_pad != B:
        x = jnp.pad(x, ((0, b_pad - B), (0, 0)))
    grid = (b_pad // tb,)

    w3_row = w3.reshape(1, -1).astype(jnp.float32)   # (1, 10) row for the VPU stage
    b3_s = b3.reshape(1, 1).astype(jnp.float32)      # scalar -> SMEM

    vmem = pltpu.MemorySpace.VMEM
    smem = pltpu.MemorySpace.SMEM

    def resident(arr):  # full-array block, same block every grid step
        return pl.BlockSpec(arr.shape, lambda i: (0,) * arr.ndim, memory_space=vmem)

    itemsize = x.dtype.itemsize
    flops = 2 * b_pad * (F * 32 + 32 * 10 + 10)
    bytes_accessed = int(
        b_pad * F * itemsize
        + sum(a.size * a.dtype.itemsize for a in (w1, b1, w2, b2, w3_row, b3_s))
        + b_pad * 4
    )

    out = pl.pallas_call(
        mlp_kernel,
        grid=grid,
        out_shape=jax.ShapeDtypeStruct((1, b_pad), jnp.float32),
        in_specs=[
            pl.BlockSpec((tb, F), lambda i: (i, 0), memory_space=vmem),  # x tile
            resident(w1),
            resident(b1),
            resident(w2),
            resident(b2),
            resident(w3_row),
            pl.BlockSpec(memory_space=smem),                             # b3 scalar
        ],
        out_specs=pl.BlockSpec((1, tb), lambda i: (0, i), memory_space=vmem),
        compiler_params=pltpu.CompilerParams(
            dimension_semantics=("parallel",),
        ),
        cost_estimate=pl.CostEstimate(
            flops=int(flops), transcendentals=0, bytes_accessed=bytes_accessed
        ),
    )(x, w1, b1, w2, b2, w3_row, b3_s)

    return out[0, :B].reshape(B, 1)


def init_params(key, input_size):
    # Deterministic init mimicking nn.Linear's uniform(-1/sqrt(fan_in), 1/sqrt(fan_in)).
    def linear(k, fan_in, fan_out):
        kw, kb = jax.random.split(k)
        bound = 1.0 / jnp.sqrt(fan_in)
        w = jax.random.uniform(kw, (fan_in, fan_out), jnp.float32, -bound, bound)
        b = jax.random.uniform(kb, (1, fan_out), jnp.float32, -bound, bound)
        return w, b

    k1, k2, k3 = jax.random.split(key, 3)
    w1, b1 = linear(k1, input_size, 32)
    w2, b2 = linear(k2, 32, 10)
    w3, b3 = linear(k3, 10, 1)
    return (w1, b1, w2, b2, w3, b3)


def _reference(x, params):
    w1, b1, w2, b2, w3, b3 = params
    h = jnp.maximum(x @ w1 + b1, 0.0)
    h = jnp.maximum(h @ w2 + b2, 0.0)
    return h @ w3 + b3


if __name__ == "__main__":
    key = jax.random.PRNGKey(0)
    k_x, k_x2, k_p = jax.random.split(key, 3)

    batch, input_size = 8, 16
    x = jax.random.normal(k_x, (batch, input_size), dtype=jnp.float32)
    params = init_params(k_p, input_size)

    # Small-batch run (single tile).
    out = net_forward(x, params)
    jax.block_until_ready(out)
    ref = _reference(x, params)
    assert out.shape == (batch, 1)
    assert jnp.allclose(out, ref, atol=2e-5, rtol=1e-5)

    # Multi-tile run exercising the batch grid + padding path (B not multiple of TB).
    batch2 = 300
    x2 = jax.random.normal(k_x2, (batch2, input_size), dtype=jnp.float32)
    out2 = net_forward(x2, params, tb=128)
    jax.block_until_ready(out2)
    ref2 = _reference(x2, params)
    assert out2.shape == (batch2, 1)
    assert jnp.allclose(out2, ref2, atol=2e-5, rtol=1e-5)

    print("KERNEL_OK")
</pallas_src>

<mosaic_0001>
module attributes {stable_mosaic.version = 11 : i64} {
  func.func @mlp_kernel(%arg0: i32, %arg1: memref<128x16xf32, #tpu.memory_space<vmem>>, %arg2: memref<16x32xf32, #tpu.memory_space<vmem>>, %arg3: memref<1x32xf32, #tpu.memory_space<vmem>>, %arg4: memref<32x10xf32, #tpu.memory_space<vmem>>, %arg5: memref<1x10xf32, #tpu.memory_space<vmem>>, %arg6: memref<1x10xf32, #tpu.memory_space<vmem>>, %arg7: memref<1x1xf32, #tpu.memory_space<smem>>, %arg8: memref<1x128xf32, #tpu.memory_space<vmem>>) attributes {dimension_semantics = [#tpu.dimension_semantics<parallel>], iteration_bounds = array<i64: 1>, scalar_prefetch = 0 : i64, scratch_operands = 0 : i64, tpu.core_type = #tpu.core_type<tc>, window_params = [{transform_indices = @transform_0, window_bounds = array<i64: 128, 16>}, {pipeline_mode = #tpu.pipeline_mode<synchronous>, transform_indices = @transform_1, window_bounds = array<i64: 16, 32>}, {pipeline_mode = #tpu.pipeline_mode<synchronous>, transform_indices = @transform_2, window_bounds = array<i64: 1, 32>}, {pipeline_mode = #tpu.pipeline_mode<synchronous>, transform_indices = @transform_3, window_bounds = array<i64: 32, 10>}, {pipeline_mode = #tpu.pipeline_mode<synchronous>, transform_indices = @transform_4, window_bounds = array<i64: 1, 10>}, {pipeline_mode = #tpu.pipeline_mode<synchronous>, transform_indices = @transform_5, window_bounds = array<i64: 1, 10>}, {transform_indices = @transform_6, window_bounds = array<i64: 1, 1>}, {transform_indices = @transform_7, window_bounds = array<i64: 1, 128>}]} {
    %c0 = arith.constant 0 : index
    %c0_0 = arith.constant 0 : index
    %0 = vector.load %arg1[%c0, %c0_0] : memref<128x16xf32, #tpu.memory_space<vmem>>, vector<128x16xf32>
    %c0_1 = arith.constant 0 : index
    %c0_2 = arith.constant 0 : index
    %1 = vector.load %arg2[%c0_1, %c0_2] : memref<16x32xf32, #tpu.memory_space<vmem>>, vector<16x32xf32>
    %cst = arith.constant dense<0.000000e+00> : vector<128x32xf32>
    %2 = tpu.matmul %0, %1, %cst {dimension_numbers = #tpu.dot_dimension_numbers<[1], [0], [0], [1], [0, 0, 1, 1], [], []>} : vector<128x16xf32>, vector<16x32xf32>, vector<128x32xf32> -> vector<128x32xf32>
    %c0_3 = arith.constant 0 : index
    %c0_4 = arith.constant 0 : index
    %3 = vector.load %arg3[%c0_3, %c0_4] : memref<1x32xf32, #tpu.memory_space<vmem>>, vector<1x32xf32>
    %4 = vector.broadcast %3 : vector<1x32xf32> to vector<128x32xf32>
    %5 = arith.addf %2, %4 : vector<128x32xf32>
    %cst_5 = arith.constant 0.000000e+00 : f32
    %6 = vector.broadcast %cst_5 : f32 to vector<128x32xf32>
    %7 = arith.maximumf %5, %6 : vector<128x32xf32>
    %c0_6 = arith.constant 0 : index
    %c0_7 = arith.constant 0 : index
    %8 = vector.load %arg4[%c0_6, %c0_7] : memref<32x10xf32, #tpu.memory_space<vmem>>, vector<32x10xf32>
    %cst_8 = arith.constant dense<0.000000e+00> : vector<128x10xf32>
    %9 = tpu.matmul %7, %8, %cst_8 {dimension_numbers = #tpu.dot_dimension_numbers<[1], [0], [0], [1], [0, 0, 1, 1], [], []>} : vector<128x32xf32>, vector<32x10xf32>, vector<128x10xf32> -> vector<128x10xf32>
    %c0_9 = arith.constant 0 : index
    %c0_10 = arith.constant 0 : index
    %10 = vector.load %arg5[%c0_9, %c0_10] : memref<1x10xf32, #tpu.memory_space<vmem>>, vector<1x10xf32>
    %11 = vector.broadcast %10 : vector<1x10xf32> to vector<128x10xf32>
    %12 = arith.addf %9, %11 : vector<128x10xf32>
    %cst_11 = arith.constant 0.000000e+00 : f32
    %13 = vector.broadcast %cst_11 : f32 to vector<128x10xf32>
    %14 = arith.maximumf %12, %13 : vector<128x10xf32>
    %c0_12 = arith.constant 0 : index
    %c0_13 = arith.constant 0 : index
    %15 = vector.load %arg6[%c0_12, %c0_13] : memref<1x10xf32, #tpu.memory_space<vmem>>, vector<1x10xf32>
    %16 = vector.broadcast %15 : vector<1x10xf32> to vector<128x10xf32>
    %17 = arith.mulf %14, %16 : vector<128x10xf32>
    %cst_14 = arith.constant dense<0.000000e+00> : vector<128xf32>
    %18 = vector.multi_reduction <add>, %17, %cst_14 [1] : vector<128x10xf32> to vector<128xf32>
    %19 = vector.shape_cast %18 : vector<128xf32> to vector<128x1xf32>
    %c0_15 = arith.constant 0 : index
    %c0_16 = arith.constant 0 : index
    %20 = memref.load %arg7[%c0_15, %c0_16] : memref<1x1xf32, #tpu.memory_space<smem>>
    %21 = vector.broadcast %20 : f32 to vector<128x1xf32>
    %22 = arith.addf %19, %21 : vector<128x1xf32>
    %23 = tpu.transpose %22, [1, 0] : vector<128x1xf32> -> vector<1x128xf32>
    %c0_17 = arith.constant 0 : index
    %c0_18 = arith.constant 0 : index
    %24 = vector.load %arg8[%c0_17, %c0_18] : memref<1x128xf32, #tpu.memory_space<vmem>>, vector<1x128xf32>
    tpu.vector_store %arg8[%c0_17, %c0_18], %23 {strides = array<i32>} : memref<1x128xf32, #tpu.memory_space<vmem>>, vector<1x128xf32>,
    return
  }
  func.func @transform_0(%arg0: i32) -> (i32, i32) {
    %c0_i32 = arith.constant 0 : i32
    %c0_i32_0 = arith.constant 0 : i32
    return %arg0, %c0_i32 : i32, i32
  }
  func.func @transform_1(%arg0: i32) -> (i32, i32) {
    %c0_i32 = arith.constant 0 : i32
    %c0_i32_0 = arith.constant 0 : i32
    %c0_i32_1 = arith.constant 0 : i32
    return %c0_i32, %c0_i32_0 : i32, i32
  }
  func.func @transform_2(%arg0: i32) -> (i32, i32) {
    %c0_i32 = arith.constant 0 : i32
    %c0_i32_0 = arith.constant 0 : i32
    %c0_i32_1 = arith.constant 0 : i32
    return %c0_i32, %c0_i32_0 : i32, i32
  }
  func.func @transform_3(%arg0: i32) -> (i32, i32) {
    %c0_i32 = arith.constant 0 : i32
    %c0_i32_0 = arith.constant 0 : i32
    %c0_i32_1 = arith.constant 0 : i32
    return %c0_i32, %c0_i32_0 : i32, i32
  }
  func.func @transform_4(%arg0: i32) -> (i32, i32) {
    %c0_i32 = arith.constant 0 : i32
    %c0_i32_0 = arith.constant 0 : i32
    %c0_i32_1 = arith.constant 0 : i32
    return %c0_i32, %c0_i32_0 : i32, i32
  }
  func.func @transform_5(%arg0: i32) -> (i32, i32) {
    %c0_i32 = arith.constant 0 : i32
    %c0_i32_0 = arith.constant 0 : i32
    %c0_i32_1 = arith.constant 0 : i32
    return %c0_i32, %c0_i32_0 : i32, i32
  }
  func.func @transform_6(%arg0: i32) -> (i32, i32) {
    %c0_i32 = arith.constant 0 : i32
    %c0_i32_0 = arith.constant 0 : i32
    %c0_i32_1 = arith.constant 0 : i32
    return %c0_i32, %c0_i32_0 : i32, i32
  }
  func.func @transform_7(%arg0: i32) -> (i32, i32) {
    %c0_i32 = arith.constant 0 : i32
    %c0_i32_0 = arith.constant 0 : i32
    return %c0_i32, %arg0 : i32, i32
  }
}

</mosaic_0001>

<bundles_post_ra>
// kernel: tpu_custom_call.1
= control target key start
LH: loop header
LB: loop body
LE: loop exit
PB: predicated region body
PF: predicated region fallthrough
CT: control target
= control target key end

     0   :  { %vm50_vm0 = vcmask 130048   ;;  %s746_s0 = inlined_call_operand.vmem [shape: f32[128,16], index: 0, kind: input, shape index: {}]   ;;  %s747_s1 = inlined_call_operand.vmem [shape: f32[16,32], index: 1, kind: input, shape index: {}]   ;;  %s748_s2 = inlined_call_operand.vmem [shape: f32[1,32], index: 2, kind: input, shape index: {}]   ;;  %s749_s3 = inlined_call_operand.vmem [shape: f32[32,10], index: 3, kind: input, shape index: {}]   ;;  %s750_s4 = inlined_call_operand.vmem [shape: f32[1,10], index: 4, kind: input, shape index: {}]   ;;  %s751_s5 = inlined_call_operand.vmem [shape: f32[1,10], index: 5, kind: input, shape index: {}]   ;;  %s752_s6 = inlined_call_operand.<no memory space> [shape: f32[1,1], index: 6, kind: input, shape index: {}]   ;;  %s753_s7 = inlined_call_operand.hbm [shape: f32[1,128], index: 7, kind: output, shape index: {}]  }
   0x1   :  { %v45_v0 = vld [vmem:[%s747_s1 + $0x8] sm:$0xff]  ;;  %v44_v1 = vld [vmem:[%s747_s1] sm:$0xff] }
   0x2   :  { %113 = vmatpush.msra.mxu0 %v45_v0  ;;  %v28_v2 = vld [vmem:[%s746_s0] sm:$0xff]  ;;  %486 = vmatpush.msra.mxu3 %v45_v0 }
   0x4   :  { %114 = vmatpush.msra.mxu0 %v44_v1  ;;  %487 = vmatpush.msra.mxu3 %v44_v1 }
   0x5   :  { %13 = vsyncpa [#allocation4], 0  ;;  %454 = vmatmul.msk.f32.vlgmr.msra.gmra.mxu0 %vm50_vm0, %v28_v2  ;;  %v29_v3 = vld [vmem:[%s746_s0 + $0x8] sm:$0xff]  ;;  %v30_v4 = vld [vmem:[%s746_s0 + $0x10] sm:$0xff]  ;;  %vm188_vm1 = vcmask 261120   ;;  %vm338_vm2 = vcmask 80896  }
   0x6   :  { %v31_v5 = vld [vmem:[%s746_s0 + $0x18] sm:$0xff]  ;;  %v32_v6 = vld [vmem:[%s746_s0 + $0x20] sm:$0xff]  ;;  %v37_v7 = vld [vmem:[%s746_s0 + $0x48] sm:$0xff]  ;;  %s445_s26 = sshll.u32 %s753_s7, 4  ;;  %s446_s26 = int_to_ptr.hbm [resolvable:$true] %s445_s26 }
   0x7   :  { %463 = vmatmul.msk.f32.vlgmr.msra.gmra.mxu3 %vm50_vm0, %v37_v7  ;;  %v183_v8 = vld [vmem:[%s749_s3 + $0x18] sm:$0xff]  ;;  %v33_v9 = vld [vmem:[%s746_s0 + $0x28] sm:$0xff]  ;;  %v38_v10 = vld [vmem:[%s746_s0 + $0x50] sm:$0xff] }
   0x8   :  { %249 = vmatpush.msra.mxu1 %v183_v8  ;;  %488 = vmatpush.msra.mxu2 %v183_v8  ;;  %v34_v11 = vld [vmem:[%s746_s0 + $0x30] sm:$0xff]  ;;  %v39_v12 = vld [vmem:[%s746_s0 + $0x58] sm:$0xff]  ;;  %v40_v14 = vld [vmem:[%s746_s0 + $0x60] sm:$0xff] }
   0x9   :  { %v35_v13 = vld [vmem:[%s746_s0 + $0x38] sm:$0xff]  ;;  %v36_v15 = vld [vmem:[%s746_s0 + $0x40] sm:$0xff]  ;;  %v41_v16 = vld [vmem:[%s746_s0 + $0x68] sm:$0xff] }
   0xa   :  { %v182_v17 = vld [vmem:[%s749_s3 + $0x10] sm:$0xff]  ;;  %v181_v18 = vld [vmem:[%s749_s3 + $0x8] sm:$0xff]  ;;  %v180_v19 = vld [vmem:[%s749_s3] sm:$0xff] }
   0xb   :  { %250 = vmatpush.msra.mxu1 %v182_v17  ;;  %489 = vmatpush.msra.mxu2 %v182_v17  ;;  %v42_v20 = vld [vmem:[%s746_s0 + $0x70] sm:$0xff]  ;;  %v644_v21 = vld [vmem:[%s748_s2] ss:$0 sm:$0xff]  ;;  %v43_v23 = vld [vmem:[%s746_s0 + $0x78] sm:$0xff] }
   0xc   :  { %v689_v7 = vld [vmem:[%s751_s5] ss:$0 sm:$0xff] }
   0xd   :  { %455 = vmatmul.msk.f32.gmra.mxu0 %vm50_vm0, %v29_v3  ;;  %251 = vmatpush.msra.mxu1 %v181_v18  ;;  %v682_v3 = vld [vmem:[%s750_s4] ss:$0 sm:$0xff] }
   0xe   :  { %490 = vmatpush.msra.mxu2 %v181_v18 }
   0xf   :  { %464 = vmatmul.msk.f32.gmra.mxu3 %vm50_vm0, %v38_v10  ;;  %252 = vmatpush.msra.mxu1 %v180_v19 }
  0x10   :  { %491 = vmatpush.msra.mxu2 %v180_v19 }
  0x15   :  { %456 = vmatmul.msk.f32.gmra.mxu0 %vm50_vm0, %v30_v4 }
  0x17   :  { %465 = vmatmul.msk.f32.gmra.mxu3 %vm50_vm0, %v39_v12 }
  0x1d   :  { %457 = vmatmul.msk.f32.gmra.mxu0 %vm50_vm0, %v31_v5 }
  0x1f   :  { %466 = vmatmul.msk.f32.gmra.mxu3 %vm50_vm0, %v40_v14 }
  0x25   :  { %458 = vmatmul.msk.f32.gmra.mxu0 %vm50_vm0, %v32_v6 }
  0x27   :  { %467 = vmatmul.msk.f32.gmra.mxu3 %vm50_vm0, %v41_v16 }
  0x2d   :  { %459 = vmatmul.msk.f32.gmra.mxu0 %vm50_vm0, %v33_v9 }
  0x2f   :  { %468 = vmatmul.msk.f32.gmra.mxu3 %vm50_vm0, %v42_v20 }
  0x35   :  { %460 = vmatmul.msk.f32.gmra.mxu0 %vm50_vm0, %v34_v11 }
  0x37   :  { %469 = vmatmul.msk.f32.gmra.mxu3 %vm50_vm0, %v43_v23 }
  0x3d   :  { %461 = vmatmul.msk.f32.gmra.mxu0 %vm50_vm0, %v35_v13 }
  0x45   :  { %462 = vmatmul.msk.f32.gmra.mxu0 %vm50_vm0, %v36_v15 }
  0x82   :  { %v116_v22 = vpop.f32.mrf.mxu0 }
  0x83   :  { %v117_v24 = vadd.f32 %v644_v21, %v116_v22 }
  0x85   :  { %v164_v25 = vmax.f32 %v117_v24, 0.0 }
  0x87   :  { %470 = vmatmul.msk.f32.vlgmr.msra.gmra.mxu1 %vm188_vm1, %v164_v25 }
  0x8a   :  { %v119_v26 = vpop.f32.mrf.mxu0  ;;  %v143_v46 = vpop.f32.mrf.mxu3 }
  0x8b   :  { %v120_v27 = vadd.f32 %v644_v21, %v119_v26  ;;  %v144_v52 = vadd.f32 %v644_v21, %v143_v46 }
  0x8d   :  { %v165_v28 = vmax.f32 %v120_v27, 0.0  ;;  %v173_v53 = vmax.f32 %v144_v52, 0.0 }
  0x8f   :  { %471 = vmatmul.msk.f32.gmra.mxu1 %vm188_vm1, %v165_v28 }
  0x92   :  { %v122_v29 = vpop.f32.mrf.mxu0  ;;  %v146_v51 = vpop.f32.mrf.mxu3 }
  0x93   :  { %v123_v30 = vadd.f32 %v644_v21, %v122_v29  ;;  %v147_v54 = vadd.f32 %v644_v21, %v146_v51 }
  0x95   :  { %v166_v31 = vmax.f32 %v123_v30, 0.0  ;;  %v174_v56 = vmax.f32 %v147_v54, 0.0 }
  0x97   :  { %472 = vmatmul.msk.f32.gmra.mxu1 %vm188_vm1, %v166_v31 }
  0x9a   :  { %v125_v32 = vpop.f32.mrf.mxu0  ;;  %v149_v55 = vpop.f32.mrf.mxu3 }
  0x9b   :  { %v126_v33 = vadd.f32 %v644_v21, %v125_v32  ;;  %v150_v57 = vadd.f32 %v644_v21, %v149_v55 }
  0x9d   :  { %v167_v34 = vmax.f32 %v126_v33, 0.0  ;;  %v175_v59 = vmax.f32 %v150_v57, 0.0 }
  0x9f   :  { %473 = vmatmul.msk.f32.gmra.mxu1 %vm188_vm1, %v167_v34 }
  0xa2   :  { %v128_v35 = vpop.f32.mrf.mxu0  ;;  %v152_v58 = vpop.f32.mrf.mxu3 }
  0xa3   :  { %v129_v36 = vadd.f32 %v644_v21, %v128_v35  ;;  %v153_v60 = vadd.f32 %v644_v21, %v152_v58 }
  0xa5   :  { %v168_v37 = vmax.f32 %v129_v36, 0.0  ;;  %v176_v61 = vmax.f32 %v153_v60, 0.0 }
  0xa7   :  { %474 = vmatmul.msk.f32.gmra.mxu1 %vm188_vm1, %v168_v37 }
  0xaa   :  { %v131_v38 = vpop.f32.mrf.mxu0  ;;  %v155_v62 = vpop.f32.mrf.mxu3 }
  0xab   :  { %v132_v39 = vadd.f32 %v644_v21, %v131_v38  ;;  %v156_v63 = vadd.f32 %v644_v21, %v155_v62 }
  0xad   :  { %v169_v40 = vmax.f32 %v132_v39, 0.0  ;;  %v177_v0 = vmax.f32 %v156_v63, 0.0 }
  0xaf   :  { %475 = vmatmul.msk.f32.gmra.mxu1 %vm188_vm1, %v169_v40 }
  0xb2   :  { %v134_v41 = vpop.f32.mrf.mxu0  ;;  %v158_v1 = vpop.f32.mrf.mxu3 }
  0xb3   :  { %v135_v42 = vadd.f32 %v644_v21, %v134_v41  ;;  %v159_v2 = vadd.f32 %v644_v21, %v158_v1 }
  0xb5   :  { %v170_v43 = vmax.f32 %v135_v42, 0.0  ;;  %v178_v4 = vmax.f32 %v159_v2, 0.0 }
  0xb7   :  { %476 = vmatmul.msk.f32.gmra.mxu1 %vm188_vm1, %v170_v43 }
  0xba   :  { %v137_v44 = vpop.f32.mrf.mxu0  ;;  %v161_v8 = vpop.f32.mrf.mxu3 }
  0xbb   :  { %v138_v45 = vadd.f32 %v644_v21, %v137_v44  ;;  %v162_v10 = vadd.f32 %v644_v21, %v161_v8 }
  0xbd   :  { %v171_v47 = vmax.f32 %v138_v45, 0.0  ;;  %v179_v12 = vmax.f32 %v162_v10, 0.0 }
  0xbf   :  { %477 = vmatmul.msk.f32.gmra.mxu1 %vm188_vm1, %v171_v47 }
  0xc2   :  { %v140_v48 = vpop.f32.mrf.mxu0 }
  0xc3   :  { %v141_v49 = vadd.f32 %v644_v21, %v140_v48 }
  0xc5   :  { %v172_v50 = vmax.f32 %v141_v49, 0.0 }
  0xc7   :  { %478 = vmatmul.msk.f32.vlgmr.msra.gmra.mxu2 %vm188_vm1, %v172_v50 }
  0xcf   :  { %479 = vmatmul.msk.f32.gmra.mxu2 %vm188_vm1, %v173_v53 }
  0xd7   :  { %480 = vmatmul.msk.f32.gmra.mxu2 %vm188_vm1, %v174_v56 }
  0xdf   :  { %481 = vmatmul.msk.f32.gmra.mxu2 %vm188_vm1, %v175_v59 }
  0xe7   :  { %482 = vmatmul.msk.f32.gmra.mxu2 %vm188_vm1, %v176_v61 }
  0xef   :  { %483 = vmatmul.msk.f32.gmra.mxu2 %vm188_vm1, %v177_v0 }
  0xf7   :  { %484 = vmatmul.msk.f32.gmra.mxu2 %vm188_vm1, %v178_v4 }
  0xff   :  { %485 = vmatmul.msk.f32.gmra.mxu2 %vm188_vm1, %v179_v12 }
 0x104   :  { %v254_v5 = vpop.f32.mrf.mxu1 }
 0x105   :  { %v255_v6 = vadd.f32 %v682_v3, %v254_v5 }
 0x107   :  { %v302_v9 = vmax.f32 %v255_v6, 0.0 }
 0x109   :  { %v322_v11 = vmul.f32 %v689_v7, %v302_v9 }
 0x10b   :  { %v339_v13 = vsel %vm338_vm2, %v322_v11, 0.0 }
 0x10c   :  { %v257_v14 = vpop.f32.mrf.mxu1  ;;  %340 = vadd.xlane.f32.xlu0 %v339_v13 }
 0x10d   :  { %v258_v15 = vadd.f32 %v682_v3, %v257_v14 }
 0x10f   :  { %v303_v16 = vmax.f32 %v258_v15, 0.0 }
 0x111   :  { %v323_v17 = vmul.f32 %v689_v7, %v303_v16 }
 0x113   :  { %v342_v18 = vsel %vm338_vm2, %v323_v17, 0.0 }
 0x114   :  { %v260_v19 = vpop.f32.mrf.mxu1  ;;  %343 = vadd.xlane.f32.xlu0 %v342_v18 }
 0x115   :  { %v261_v20 = vadd.f32 %v682_v3, %v260_v19 }
 0x117   :  { %v304_v21 = vmax.f32 %v261_v20, 0.0 }
 0x119   :  { %v324_v22 = vmul.f32 %v689_v7, %v304_v21 }
 0x11b   :  { %v345_v23 = vsel %vm338_vm2, %v324_v22, 0.0 }
 0x11c   :  { %v263_v24 = vpop.f32.mrf.mxu1  ;;  %346 = vadd.xlane.f32.xlu1 %v345_v23 }
 0x11d   :  { %v264_v25 = vadd.f32 %v682_v3, %v263_v24 }
 0x11f   :  { %v305_v26 = vmax.f32 %v264_v25, 0.0 }
 0x121   :  { %v325_v27 = vmul.f32 %v689_v7, %v305_v26 }
 0x123   :  { %v348_v28 = vsel %vm338_vm2, %v325_v27, 0.0 }
 0x124   :  { %v266_v29 = vpop.f32.mrf.mxu1  ;;  %349 = vadd.xlane.f32.xlu1 %v348_v28  ;;  %v388_v28 = vstv %s752_s6  ;;  %s522_s6 = smov [#allocation3]  }
 0x125   :  { %v267_v30 = vadd.f32 %v682_v3, %v266_v29  ;;  %s443_s23 = sshll.u32 %s522_s6, 4  ;;  %s444_s23 = int_to_ptr.vmem [resolvable:$true] %s443_s23 }
 0x127   :  { %v306_v31 = vmax.f32 %v267_v30, 0.0 }
 0x129   :  { %v326_v32 = vmul.f32 %v689_v7, %v306_v31 }
 0x12b   :  { %v351_v33 = vsel %vm338_vm2, %v326_v32, 0.0 }
 0x12c   :  { %v269_v34 = vpop.f32.mrf.mxu1  ;;  %352 = vadd.xlane.f32.xlu2 %v351_v33 }
 0x12d   :  { %v270_v35 = vadd.f32 %v682_v3, %v269_v34 }
 0x12f   :  { %v307_v36 = vmax.f32 %v270_v35, 0.0 }
 0x131   :  { %v327_v37 = vmul.f32 %v689_v7, %v307_v36 }
 0x133   :  { %v354_v38 = vsel %vm338_vm2, %v327_v37, 0.0 }
 0x134   :  { %v272_v39 = vpop.f32.mrf.mxu1  ;;  %355 = vadd.xlane.f32.xlu2 %v354_v38 }
 0x135   :  { %v273_v40 = vadd.f32 %v682_v3, %v272_v39 }
 0x137   :  { %v308_v41 = vmax.f32 %v273_v40, 0.0 }
 0x139   :  { %v328_v42 = vmul.f32 %v689_v7, %v308_v41 }
 0x13b   :  { %v357_v43 = vsel %vm338_vm2, %v328_v42, 0.0 }
 0x13c   :  { %v275_v44 = vpop.f32.mrf.mxu1  ;;  %358 = vadd.xlane.f32.xlu0 %v357_v43 }
 0x13d   :  { %v276_v45 = vadd.f32 %v682_v3, %v275_v44 }
 0x13f   :  { %v309_v46 = vmax.f32 %v276_v45, 0.0 }
 0x141   :  { %v329_v47 = vmul.f32 %v689_v7, %v309_v46 }
 0x143   :  { %v360_v48 = vsel %vm338_vm2, %v329_v47, 0.0 }
 0x144   :  { %361 = vadd.xlane.f32.xlu1 %v360_v48 }
 0x14a   :  { %v278_v49 = vpop.f32.mrf.mxu2 }
 0x14b   :  { %v279_v50 = vadd.f32 %v682_v3, %v278_v49 }
 0x14d   :  { %v310_v51 = vmax.f32 %v279_v50, 0.0 }
 0x14f   :  { %v330_v52 = vmul.f32 %v689_v7, %v310_v51 }
 0x151   :  { %v363_v53 = vsel %vm338_vm2, %v330_v52, 0.0 }
 0x152   :  { %v281_v54 = vpop.f32.mrf.mxu2  ;;  %364 = vadd.xlane.f32.xlu2 %v363_v53 }
 0x153   :  { %v282_v55 = vadd.f32 %v682_v3, %v281_v54 }
 0x155   :  { %v311_v56 = vmax.f32 %v282_v55, 0.0 }
 0x157   :  { %v331_v57 = vmul.f32 %v689_v7, %v311_v56 }
 0x159   :  { %v366_v58 = vsel %vm338_vm2, %v331_v57, 0.0 }
 0x15a   :  { %v284_v59 = vpop.f32.mrf.mxu2  ;;  %367 = vadd.xlane.f32.xlu0 %v366_v58 }
 0x15b   :  { %v285_v60 = vadd.f32 %v682_v3, %v284_v59 }
 0x15d   :  { %v312_v61 = vmax.f32 %v285_v60, 0.0 }
 0x15f   :  { %v332_v62 = vmul.f32 %v689_v7, %v312_v61 }
 0x161   :  { %v369_v63 = vsel %vm338_vm2, %v332_v62, 0.0 }
 0x162   :  { %v287_v0 = vpop.f32.mrf.mxu2  ;;  %370 = vadd.xlane.f32.xlu1 %v369_v63 }
 0x163   :  { %v288_v1 = vadd.f32 %v682_v3, %v287_v0 }
 0x165   :  { %v313_v2 = vmax.f32 %v288_v1, 0.0 }
 0x167   :  { %v333_v4 = vmul.f32 %v689_v7, %v313_v2 }
 0x169   :  { %v372_v5 = vsel %vm338_vm2, %v333_v4, 0.0 }
 0x16a   :  { %v290_v6 = vpop.f32.mrf.mxu2  ;;  %373 = vadd.xlane.f32.xlu2 %v372_v5 }
 0x16b   :  { %v291_v8 = vadd.f32 %v682_v3, %v290_v6 }
 0x16d   :  { %v314_v9 = vmax.f32 %v291_v8, 0.0 }
 0x16f   :  { %v334_v10 = vmul.f32 %v689_v7, %v314_v9 }
 0x171   :  { %v375_v11 = vsel %vm338_vm2, %v334_v10, 0.0 }
 0x172   :  { %v293_v12 = vpop.f32.mrf.mxu2  ;;  %376 = vadd.xlane.f32.xlu0 %v375_v11 }
 0x173   :  { %v294_v13 = vadd.f32 %v682_v3, %v293_v12 }
 0x175   :  { %v315_v14 = vmax.f32 %v294_v13, 0.0 }
 0x177   :  { %v335_v15 = vmul.f32 %v689_v7, %v315_v14 }
 0x179   :  { %v378_v16 = vsel %vm338_vm2, %v335_v15, 0.0 }
 0x17a   :  { %379 = vadd.xlane.f32.xlu1 %v378_v16  ;;  %v296_v17 = vpop.f32.mrf.mxu2 }
 0x17b   :  { %v297_v18 = vadd.f32 %v682_v3, %v296_v17 }
 0x17d   :  { %v316_v19 = vmax.f32 %v297_v18, 0.0 }
 0x17f   :  { %v336_v20 = vmul.f32 %v689_v7, %v316_v19  ;;  %v341_v27 = vpop.xlane.xlu0 %340 }
 0x180   :  { %v389_v29 = vadd.f32 %v388_v28, %v341_v27 }
 0x181   :  { %v381_v21 = vsel %vm338_vm2, %v336_v20, 0.0 }
 0x182   :  { %v299_v22 = vpop.f32.mrf.mxu2  ;;  %382 = vadd.xlane.f32.xlu2 %v381_v21 }
 0x183   :  { %v300_v23 = vadd.f32 %v682_v3, %v299_v22 }
 0x185   :  { %v317_v24 = vmax.f32 %v300_v23, 0.0 }
 0x187   :  { %v337_v25 = vmul.f32 %v689_v7, %v317_v24  ;;  %v344_v30 = vpop.xlane.xlu0 %343 }
 0x188   :  { %v390_v31 = vadd.f32 %v388_v28, %v344_v30 }
 0x189   :  { %v384_v26 = vsel %vm338_vm2, %v337_v25, 0.0 }
 0x18a   :  { %385 = vadd.xlane.f32.xlu0 %v384_v26 }
 0x18f   :  { %v347_v32 = vpop.xlane.xlu1 %346 }
 0x190   :  { %v391_v33 = vadd.f32 %v388_v28, %v347_v32 }
 0x197   :  { %v350_v3 = vpop.xlane.xlu1 %349 }
 0x198   :  { %v392_v34 = vadd.f32 %v388_v28, %v350_v3 }
 0x19f   :  { %v353_v7 = vpop.xlane.xlu2 %352 }
 0x1a0   :  { %v393_v35 = vadd.f32 %v388_v28, %v353_v7 }
 0x1a7   :  { %v356_v36 = vpop.xlane.xlu2 %355 }
 0x1a8   :  { %v394_v37 = vadd.f32 %v388_v28, %v356_v36 }
 0x1af   :  { %v359_v38 = vpop.xlane.xlu0 %358 }
 0x1b0   :  { %v395_v39 = vadd.f32 %v388_v28, %v359_v38 }
 0x1b4   :  { %405 = vxpose.xlu1.b32.start [1/16] (narrow) %v389_v29, 8 }
 0x1b7   :  { %v362_v40 = vpop.xlane.xlu1 %361 }
 0x1b8   :  { %v396_v41 = vadd.f32 %v388_v28, %v362_v40 }
 0x1bc   :  { %406 = vxpose.xlu1.b32.cont [2/16] (narrow) %v390_v31, 8 }
 0x1c4   :  { %407 = vxpose.xlu1.b32.cont [3/16] (narrow) %v391_v33, 8 }
 0x1c5   :  { %v365_v42 = vpop.xlane.xlu2 %364 }
 0x1c6   :  { %v397_v43 = vadd.f32 %v388_v28, %v365_v42 }
 0x1cc   :  { %408 = vxpose.xlu1.b32.cont [4/16] (narrow) %v392_v34, 8 }
 0x1cd   :  { %v368_v44 = vpop.xlane.xlu0 %367 }
 0x1ce   :  { %v398_v45 = vadd.f32 %v388_v28, %v368_v44 }
 0x1d4   :  { %409 = vxpose.xlu1.b32.cont [5/16] (narrow) %v393_v35, 8 }
 0x1d5   :  { %v371_v46 = vpop.xlane.xlu1 %370 }
 0x1d6   :  { %v399_v47 = vadd.f32 %v388_v28, %v371_v46 }
 0x1dc   :  { %410 = vxpose.xlu1.b32.cont [6/16] (narrow) %v394_v37, 8 }
 0x1dd   :  { %v374_v48 = vpop.xlane.xlu2 %373 }
 0x1de   :  { %v400_v49 = vadd.f32 %v388_v28, %v374_v48 }
 0x1e4   :  { %411 = vxpose.xlu1.b32.cont [7/16] (narrow) %v395_v39, 8 }
 0x1e5   :  { %v377_v50 = vpop.xlane.xlu0 %376 }
 0x1e6   :  { %v401_v51 = vadd.f32 %v388_v28, %v377_v50 }
 0x1ec   :  { %412 = vxpose.xlu1.b32.cont [8/16] (narrow) %v396_v41, 8 }
 0x1ed   :  { %v380_v52 = vpop.xlane.xlu1 %379 }
 0x1ee   :  { %v402_v53 = vadd.f32 %v388_v28, %v380_v52 }
 0x1f4   :  { %413 = vxpose.xlu1.b32.cont [9/16] (narrow) %v397_v43, 8 }
 0x1f5   :  { %v383_v54 = vpop.xlane.xlu2 %382 }
 0x1f6   :  { %v403_v55 = vadd.f32 %v388_v28, %v383_v54 }
 0x1fc   :  { %414 = vxpose.xlu1.b32.cont [10/16] (narrow) %v398_v45, 8 }
 0x1fd   :  { %v386_v56 = vpop.xlane.xlu0 %385 }
 0x1fe   :  { %v404_v57 = vadd.f32 %v388_v28, %v386_v56 }
 0x204   :  { %415 = vxpose.xlu1.b32.cont [11/16] (narrow) %v399_v47, 8 }
 0x20c   :  { %416 = vxpose.xlu1.b32.cont [12/16] (narrow) %v400_v49, 8 }
 0x214   :  { %417 = vxpose.xlu1.b32.cont [13/16] (narrow) %v401_v51, 8 }
 0x21c   :  { %418 = vxpose.xlu1.b32.cont [14/16] (narrow) %v402_v53, 8 }
 0x224   :  { %419 = vxpose.xlu1.b32.cont [15/16] (narrow) %v403_v55, 8 }
 0x22c   :  { %420 = vxpose.xlu1.b32.end [16/16] (narrow) %v404_v57, 8 }
 0x258   :  { %v421_v58 = vpop.trf.xlu1 }
 0x259   :  { %437 = vst [vmem:[#allocation3] sm:$0x1] %v421_v58 }
 0x25a   :  { %448 = dma.vmem_to_hbm [thread:$0]  %s444_s23, 16, %s446_s26, [#allocation4]  }
 0x25b   :  { %520 = dma.done.wait [#allocation4], 16  }
 0x25c   :  { %521 = vsyncadd [#allocation4], 4294967280 }
 0x25d   :  { %453 = vsyncpa [#allocation4], 1 }

</bundles_post_ra>
